<compile_context>
chip_gen: v7x
topology: tpu7x:2x2x1
jax: 0.10.0
libtpu: 0.0.40
codegen_flags: <defaults>
</compile_context>

<pallas_src>
import functools

import jax
import jax.numpy as jnp
from jax import lax
from jax.experimental import pallas as pl
from jax.experimental.pallas import tpu as pltpu


# ---------------------------------------------------------------------------
# Kernel bodies
# ---------------------------------------------------------------------------

def _eval_kernel_chw(x_ref, wf_ref, b_ref, o_ref, *, precision):
    """Eval path, HW on lanes. Residual folded into the weight: o = (W+I)@x + b.

    x_ref: (1, C, T_HW)  wf_ref: (C, C)  b_ref: (C, 1)  o_ref: (1, C, T_HW)
    """
    y = jnp.dot(wf_ref[...], x_ref[0],
                preferred_element_type=jnp.float32, precision=precision)
    o_ref[0] = (y + b_ref[...]).astype(o_ref.dtype)


def _train_kernel_chw(scale_ref, x_ref, w_ref, b_ref, o_ref, *, precision):
    """Training path, HW on lanes: o = scale_b * (W@x + b) + x.

    scale_ref: (N,) f32 in SMEM (whole array), indexed by the batch grid axis.
    """
    x = x_ref[0]
    y = jnp.dot(w_ref[...], x,
                preferred_element_type=jnp.float32, precision=precision)
    y = y + b_ref[...]
    scale = scale_ref[pl.program_id(0)]
    o_ref[0] = (y * scale + x.astype(jnp.float32)).astype(o_ref.dtype)


def _eval_kernel_hwc(x_ref, wtf_ref, b_ref, o_ref, *, precision):
    """Eval path for HW < 128 (deep stages): channels on lanes, o = x @ (W+I)^T + b.

    x_ref: (1, HW, C)  wtf_ref: (C_in, C_out)  b_ref: (1, C)  o_ref: (1, HW, C)
    """
    y = jnp.dot(x_ref[0], wtf_ref[...],
                preferred_element_type=jnp.float32, precision=precision)
    o_ref[0] = (y + b_ref[...]).astype(o_ref.dtype)


def _train_kernel_hwc(scale_ref, x_ref, wt_ref, b_ref, o_ref, *, precision):
    x = x_ref[0]
    y = jnp.dot(x, wt_ref[...],
                preferred_element_type=jnp.float32, precision=precision)
    y = y + b_ref[...]
    scale = scale_ref[pl.program_id(0)]
    o_ref[0] = (y * scale + x.astype(jnp.float32)).astype(o_ref.dtype)


# ---------------------------------------------------------------------------
# VMEM / tiling policy
# ---------------------------------------------------------------------------

def _scoped_vmem_limit():
    """~3/4 of physical VMEM: ~48 MiB on v7x, ~96 MiB on v5e/v6e."""
    try:
        phys = int(pltpu.get_tpu_info().vmem_capacity_bytes)
    except Exception:
        phys = 64 * 1024 * 1024  # conservative fallback: v7x per-TensorCore VMEM
    return (phys * 3) // 4


def _pick_tile_hw(hw, c, itemsize, vmem_limit, training):
    """Largest lane-dense HW tile (multiple of 128, <= HW) whose double-buffered
    in/out tiles *plus* the f32 kernel temporaries fit the VMEM budget."""
    # Per lane column of one tile:
    #   2x input + 2x output pipelined buffers : 4*C*itemsize
    #   f32 matmul result y                    : 4*C
    #   f32 residual copy of x (training only) : 4*C
    per_lane = 4 * c * itemsize + 4 * c + (4 * c if training else 0)
    # Cap tile VMEM well below the scoped limit; ~24 MiB of tile traffic per
    # step is already far above the ~3-4 MB needed to hide step overhead on
    # v7x, and leaves plenty of headroom for weights/bias/compiler scratch.
    budget = min(int(vmem_limit * 0.5), 24 * 1024 * 1024)
    budget -= 2 * c * c * itemsize + 2 * c * itemsize  # resident weight + bias
    budget = max(budget, 128 * per_lane)
    tile = (budget // per_lane) // 128 * 128
    return max(128, min(tile, (hw // 128) * 128))  # caller guarantees hw >= 128


# ---------------------------------------------------------------------------
# Wrapper
# ---------------------------------------------------------------------------

def _dropsample_scale(key, n, prob):
    # TODO(synk): the original torch code has a quirk (FloatTensor((N,1,1,1))
    # builds a 4-element tensor); we implement the intended per-sample
    # drop-path semantics instead.
    keep = (jax.random.uniform(key, (n,)) > prob).astype(jnp.float32)
    return keep / (1.0 - prob)


def mbconv_residual(x_nchw, w_oi, bias, *, prob=0.0, training=False, key=None):
    """out = dropsample(conv1x1(x)) + x, matching MBConvResidual.forward (NCHW)."""
    N, C, H, W = x_nchw.shape
    HW = H * W
    dtype = x_nchw.dtype
    itemsize = jnp.dtype(dtype).itemsize

    x_flat = x_nchw.reshape(N, C, HW)
    w2 = w_oi.reshape(C, C).astype(dtype)      # (C_out, C_in), as stored by Conv2d
    b2 = bias.reshape(C).astype(dtype)

    fold = (prob == 0.0) or (not training)     # Dropsample is identity -> fold W+I
    if not fold:
        if key is None:
            raise ValueError("mbconv_residual: training=True with prob>0 requires a PRNG key")
        scale = _dropsample_scale(key, N, prob)

    precision = (lax.Precision.HIGHEST if dtype == jnp.float32
                 else lax.Precision.DEFAULT)

    vmem_limit = _scoped_vmem_limit()
    cost = pl.CostEstimate(
        flops=2 * N * HW * C * C,
        transcendentals=0,
        bytes_accessed=2 * N * C * HW * itemsize + C * C * itemsize + C * itemsize,
    )
    cparams = lambda dims: pltpu.CompilerParams(     # noqa: E731
        dimension_semantics=dims, vmem_limit_bytes=vmem_limit)
    smem_spec = pl.BlockSpec(memory_space=pltpu.MemorySpace.SMEM)

    if HW < 128:
        # Deep MaxViT stages (e.g. 7x7): channels on the lane axis, full
        # spatial extent per block, lane-dense stores for large C.
        x_in = jnp.transpose(x_flat, (0, 2, 1))            # (N, HW, C)
        bias_arr = b2.reshape(1, C)
        x_spec = pl.BlockSpec((1, HW, C), lambda n: (n, 0, 0))
        w_spec = pl.BlockSpec((C, C), lambda n: (0, 0))
        b_spec = pl.BlockSpec((1, C), lambda n: (0, 0))
        o_spec = pl.BlockSpec((1, HW, C), lambda n: (n, 0, 0))
        if fold:
            w_arr = (w2.astype(jnp.float32)
                     + jnp.eye(C, dtype=jnp.float32)).T.astype(dtype)
            kernel = functools.partial(_eval_kernel_hwc, precision=precision)
            operands = (x_in, w_arr, bias_arr)
            in_specs = [x_spec, w_spec, b_spec]
        else:
            kernel = functools.partial(_train_kernel_hwc, precision=precision)
            operands = (scale, x_in, w2.T, bias_arr)
            in_specs = [smem_spec, x_spec, w_spec, b_spec]
        out_flat = pl.pallas_call(
            kernel,
            out_shape=jax.ShapeDtypeStruct((N, HW, C), dtype),
            grid=(N,),
            in_specs=in_specs,
            out_specs=o_spec,
            cost_estimate=cost,
            compiler_params=cparams(("parallel",)),
        )(*operands)
        return jnp.transpose(out_flat, (0, 2, 1)).reshape(N, C, H, W)

    # Main path: NCHW-native, HW on the lane axis, ragged last HW block if
    # HW is not a multiple of 128 (reads padded, writes clipped by Pallas).
    tile_hw = _pick_tile_hw(HW, C, itemsize, vmem_limit, training=not fold)
    grid = (N, pl.cdiv(HW, tile_hw))
    bias_arr = b2.reshape(C, 1)
    x_spec = pl.BlockSpec((1, C, tile_hw), lambda n, t: (n, 0, t))
    w_spec = pl.BlockSpec((C, C), lambda n, t: (0, 0))
    b_spec = pl.BlockSpec((C, 1), lambda n, t: (0, 0))
    o_spec = pl.BlockSpec((1, C, tile_hw), lambda n, t: (n, 0, t))
    if fold:
        w_arr = (w2.astype(jnp.float32)
                 + jnp.eye(C, dtype=jnp.float32)).astype(dtype)
        kernel = functools.partial(_eval_kernel_chw, precision=precision)
        operands = (x_flat, w_arr, bias_arr)
        in_specs = [x_spec, w_spec, b_spec]
    else:
        kernel = functools.partial(_train_kernel_chw, precision=precision)
        operands = (scale, x_flat, w2, bias_arr)
        in_specs = [smem_spec, x_spec, w_spec, b_spec]
    out_flat = pl.pallas_call(
        kernel,
        out_shape=jax.ShapeDtypeStruct((N, C, HW), dtype),
        grid=grid,
        in_specs=in_specs,
        out_specs=o_spec,
        cost_estimate=cost,
        compiler_params=cparams(("parallel", "parallel")),
    )(*operands)
    return out_flat.reshape(N, C, H, W)


# ---------------------------------------------------------------------------
# Self-test
# ---------------------------------------------------------------------------

if __name__ == "__main__":
    key = jax.random.PRNGKey(0)

    def ref_fwd(x, w, b, scale=None):
        n, c, h, wdt = x.shape
        xf = x.astype(jnp.float32).reshape(n, c, h * wdt)
        y = jnp.einsum("oi,nis->nos", w.astype(jnp.float32), xf,
                       precision=lax.Precision.HIGHEST)
        y = y + b.astype(jnp.float32)[None, :, None]
        if scale is not None:
            y = y * scale[:, None, None]
        return (y + xf).astype(x.dtype).reshape(n, c, h, wdt)

    # 1) f32 eval path (canonical small config: batch=2, channels=4, 16x16).
    N, C, H, W = 2, 4, 16, 16
    kx, kw, kb = jax.random.split(key, 3)
    x = jax.random.normal(kx, (N, C, H, W), jnp.float32)
    w = jax.random.normal(kw, (C, C), jnp.float32) * 0.1
    b = jax.random.normal(kb, (C,), jnp.float32) * 0.1
    out = jax.block_until_ready(mbconv_residual(x, w, b))
    assert out.shape == (N, C, H, W) and out.dtype == jnp.float32
    assert jnp.allclose(out, ref_fwd(x, w, b), atol=1e-5, rtol=1e-5), "f32 eval mismatch"

    # 2) bf16 streaming eval path (f32 accumulate, cast on store).
    xb, wb, bb = x.astype(jnp.bfloat16), w.astype(jnp.bfloat16), b.astype(jnp.bfloat16)
    out_b = jax.block_until_ready(mbconv_residual(xb, wb, bb))
    assert out_b.dtype == jnp.bfloat16
    assert jnp.allclose(out_b.astype(jnp.float32),
                        ref_fwd(xb, wb, bb).astype(jnp.float32),
                        atol=2e-2, rtol=2e-2), "bf16 eval mismatch"

    # 3) Ragged HW path: 14x14 = 196 is not a multiple of 128.
    kx2, kw2, kb2 = jax.random.split(jax.random.PRNGKey(1), 3)
    x2 = jax.random.normal(kx2, (2, 8, 14, 14), jnp.float32)
    w2 = jax.random.normal(kw2, (8, 8), jnp.float32) * 0.1
    b2 = jax.random.normal(kb2, (8,), jnp.float32) * 0.1
    out2 = jax.block_until_ready(mbconv_residual(x2, w2, b2))
    assert jnp.allclose(out2, ref_fwd(x2, w2, b2), atol=1e-4, rtol=1e-4), "ragged mismatch"

    # 4) Deep-stage path: 7x7 spatial (HW < 128) -> channels-on-lanes kernel.
    kx3, kw3, kb3 = jax.random.split(jax.random.PRNGKey(2), 3)
    x3 = jax.random.normal(kx3, (2, 32, 7, 7), jnp.float32)
    w3 = jax.random.normal(kw3, (32, 32), jnp.float32) * 0.1
    b3 = jax.random.normal(kb3, (32,), jnp.float32) * 0.1
    out3 = jax.block_until_ready(mbconv_residual(x3, w3, b3))
    assert jnp.allclose(out3, ref_fwd(x3, w3, b3), atol=1e-4, rtol=1e-4), "hwc mismatch"

    # 5) Training path with dropsample prob > 0 (per-batch scale via SMEM).
    kdrop = jax.random.PRNGKey(42)
    out_t = jax.block_until_ready(
        mbconv_residual(x, w, b, prob=0.5, training=True, key=kdrop))
    scale = _dropsample_scale(kdrop, N, 0.5)
    assert jnp.allclose(out_t, ref_fwd(x, w, b, scale=scale),
                        atol=1e-5, rtol=1e-5), "training mismatch"

    print("KERNEL_OK")
</pallas_src>

<mosaic_0001>
module attributes {stable_mosaic.version = 11 : i64} {
  func.func @_eval_kernel_chw(%arg0: i32, %arg1: i32, %arg2: memref<1x4x256xf32, #tpu.memory_space<vmem>>, %arg3: memref<4x4xf32, #tpu.memory_space<vmem>>, %arg4: memref<4x1xf32, #tpu.memory_space<vmem>>, %arg5: memref<1x4x256xf32, #tpu.memory_space<vmem>>) attributes {dimension_semantics = [#tpu.dimension_semantics<parallel>, #tpu.dimension_semantics<parallel>], iteration_bounds = array<i64: 2, 1>, scalar_prefetch = 0 : i64, scratch_operands = 0 : i64, tpu.core_type = #tpu.core_type<tc>, window_params = [{transform_indices = @transform_0, window_bounds = array<i64: 1, 4, 256>}, {pipeline_mode = #tpu.pipeline_mode<synchronous>, transform_indices = @transform_1, window_bounds = array<i64: 4, 4>}, {pipeline_mode = #tpu.pipeline_mode<synchronous>, transform_indices = @transform_2, window_bounds = array<i64: 4, 1>}, {transform_indices = @transform_3, window_bounds = array<i64: 1, 4, 256>}]} {
    %c0 = arith.constant 0 : index
    %c0_0 = arith.constant 0 : index
    %0 = vector.load %arg3[%c0, %c0_0] : memref<4x4xf32, #tpu.memory_space<vmem>>, vector<4x4xf32>
    %c0_1 = arith.constant 0 : index
    %c0_2 = arith.constant 0 : index
    %c0_3 = arith.constant 0 : index
    %1 = vector.load %arg2[%c0_1, %c0_2, %c0_3] : memref<1x4x256xf32, #tpu.memory_space<vmem>>, vector<1x4x256xf32>
    %2 = vector.shape_cast %1 : vector<1x4x256xf32> to vector<4x256xf32>
    %cst = arith.constant dense<0.000000e+00> : vector<4x256xf32>
    %3 = tpu.matmul %0, %2, %cst {dimension_numbers = #tpu.dot_dimension_numbers<[1], [0], [0], [1], [0, 0, 1, 1], [], []>, precision = #tpu.contract_precision<fp32>} : vector<4x4xf32>, vector<4x256xf32>, vector<4x256xf32> -> vector<4x256xf32>
    %c0_4 = arith.constant 0 : index
    %c0_5 = arith.constant 0 : index
    %4 = vector.load %arg4[%c0_4, %c0_5] : memref<4x1xf32, #tpu.memory_space<vmem>>, vector<4x1xf32>
    %5 = vector.broadcast %4 : vector<4x1xf32> to vector<4x256xf32>
    %6 = arith.addf %3, %5 : vector<4x256xf32>
    %c0_6 = arith.constant 0 : index
    %c0_7 = arith.constant 0 : index
    %c0_8 = arith.constant 0 : index
    %7 = vector.load %arg5[%c0_6, %c0_7, %c0_8] : memref<1x4x256xf32, #tpu.memory_space<vmem>>, vector<1x4x256xf32>
    %8 = vector.shape_cast %7 : vector<1x4x256xf32> to vector<4x256xf32>
    %9 = vector.shape_cast %6 : vector<4x256xf32> to vector<1x4x256xf32>
    tpu.vector_store %arg5[%c0_6, %c0_7, %c0_8], %9 {strides = array<i32>} : memref<1x4x256xf32, #tpu.memory_space<vmem>>, vector<1x4x256xf32>,
    return
  }
  func.func @transform_0(%arg0: i32, %arg1: i32) -> (i32, i32, i32) {
    %c0_i32 = arith.constant 0 : i32
    %c0_i32_0 = arith.constant 0 : i32
    return %arg0, %c0_i32, %arg1 : i32, i32, i32
  }
  func.func @transform_1(%arg0: i32, %arg1: i32) -> (i32, i32) {
    %c0_i32 = arith.constant 0 : i32
    %c0_i32_0 = arith.constant 0 : i32
    %c0_i32_1 = arith.constant 0 : i32
    return %c0_i32, %c0_i32_0 : i32, i32
  }
  func.func @transform_2(%arg0: i32, %arg1: i32) -> (i32, i32) {
    %c0_i32 = arith.constant 0 : i32
    %c0_i32_0 = arith.constant 0 : i32
    %c0_i32_1 = arith.constant 0 : i32
    return %c0_i32, %c0_i32_0 : i32, i32
  }
  func.func @transform_3(%arg0: i32, %arg1: i32) -> (i32, i32, i32) {
    %c0_i32 = arith.constant 0 : i32
    %c0_i32_0 = arith.constant 0 : i32
    return %arg0, %c0_i32, %arg1 : i32, i32, i32
  }
}

</mosaic_0001>

<bundles_post_ra>
// kernel: tpu_custom_call.1
= control target key start
LH: loop header
LB: loop body
LE: loop exit
PB: predicated region body
PF: predicated region fallthrough
CT: control target
= control target key end

     0   :  { %8 = vsyncpa [#allocation3], 0  ;;  %s1212_s0 = inlined_call_operand.hbm [shape: f32[2,4,256], index: 0, kind: input, shape index: {}]   ;;  %s1213_s1 = inlined_call_operand.vmem [shape: f32[4,4], index: 1, kind: input, shape index: {}]   ;;  %s1214_s2 = inlined_call_operand.vmem [shape: f32[4,1], index: 2, kind: input, shape index: {}]   ;;  %s1215_s3 = inlined_call_operand.hbm [shape: f32[2,4,256], index: 3, kind: output, shape index: {}]  }
   0x1   :  { %10 = vsyncpa [#allocation3 + $0x1], 0 }
   0x2   :  { %11 = vsyncpa [#allocation4], 0 }
   0x3   :  { %13 = vsyncpa [#allocation4 + $0x1], 0  ;;  %s1030_s12 = smov 0   ;;  %s1032_s13 = smov 0  }
   0x4   :  { %s1034_s14 = smov 0   ;;  %s1036_s15 = smov 0  }
   0x5   :  { %s1038_s16 = smov 0   ;;  %s1040_s17 = smov 0  }
   0x6 LB: > { %s797_s18 = sadd.s32 4294967295, %s1004_s17   ;;  %s798_s19 = sadd.s32 4294967294, %s1004_s17   ;;  %s1004_s17 = sphi %s1040_s17, %s19_s17   ;;  %s1000_s16 = sphi %s1038_s16, %s1231_s16   ;;  %s996_s15 = sphi %s1036_s15, %s1230_s15   ;;  %s992_s14 = sphi %s1034_s14, %s1229_s14   ;;  %s988_s13 = sphi %s1032_s13, %s1228_s13   ;;  %s984_s12 = sphi %s1030_s12, %s1227_s12  }
   0x7   : > { %s31_s20 = sadd.s32 1, %s1000_s16  ;;  %s40_s21 = sadd.s32 1, %s992_s14 }
   0x8   : > { %p33_p0 = scmp.ge.s32.totalorder %s31_s20, 2  ;;  %p47_p1 = scmp.ne.s32.totalorder %s992_s14, %s988_s13 }
   0x9   : > { %p48_p2 = scmp.eq.s32.totalorder %s1004_s17, 0  ;;  %p53_p3 = scmp.ne.s32.totalorder %s988_s13, %s984_s12 }
   0xa   : > { %s1233_s20 = smov (%p33_p0, %s31_s20), 0  ;;  %p54_p5 = scmp.eq.s32.totalorder %s797_s18, 0 }
   0xb   : > { %p1071_p4 = por %p48_p2, %p47_p1  ;;  %s35_s23 = ssub.s32 %s1000_s16, %s1233_s20 }
   0xc   : > { %p121_p6 = scmp.eq.s32.totalorder %s797_s18, 1  ;;  %p38_p7 = scmp.eq.s32.totalorder %s35_s23, 0 }
   0xd   : > { %p1077_p8 = por %p54_p5, %p53_p3  ;;  %p127_p10 = scmp.eq.s32.totalorder %s798_s19, 1 }
   0xe   : > { %p1081_p9 = por %p121_p6, %p47_p1  ;;  %p838_p13 = scmp.lt.s32.totalorder %s1004_s17, 2 }
   0xf   : > { %s1086_s26 = scalar_select %p38_p7, %s992_s14, %s40_s21  }
  0x10   : > { %s1219_s25 = scalar_select %p1081_p9, 1, 0 }
  0x11   : > { %p1088_p11 = por %p127_p10, %p53_p3  ;;  %s153_s28 = sand.u32 1, %s992_s14  }
  0x12   : > { %s801_s29 = sshll.u32 %s153_s28, 3  ;;  %s812_s30 = sshll.u32 %s1000_s16, 7 }
  0x13   : > { %s1220_s27 = scalar_select %p1088_p11, 1, 0 }
  0x14   : > { %s1099_s6 = scalar_lea.hbm %s1212_s0, %s812_s30  ;;  %s157_s7 = scalar_lea.vmem [#allocation2], %s801_s29 }
  0x15   : > { %s167_s8 = sshll.u32 %s157_s7, 4  ;;  %p1105_p0 = pnand %p838_p13, %p1071_p4  ;;  %s1101_s8 = int_to_ptr.vmem [resolvable:$true] %s167_s8 }
  0x16   : > { %s154_s10 = scalar_lea.sflag [#allocation3], %s153_s28  ;;  %s892_s11 = scalar_lea.hbm %s1099_s6, 128 }
  0x17   : > { %p893_p3 = scmp.ne.s32.totalorder %s1099_s6, %s892_s11  ;;  %p894_p5 = pneg %p1105_p0 }
  0x18   : > { %s897_s21 = scalar_lea.hbm %s1212_s0, 256  ;;  %p898_p4 = scmp.lt.u32.totalorder %s1099_s6, %s1212_s0 }
  0x19   : > { %p895_p6 = pnand %p894_p5, %p893_p3  ;;  %p899_p10 = scmp.lt.u32.totalorder %s897_s21, %s892_s11 }
  0x1a   : > { %p901_p12 = scmp.lt.u32.totalorder %s892_s11, %s1099_s6 }
  0x1b   : > { %p896_p7 = pneg %p895_p6  ;;  %p900_p13 = por %p899_p10, %p898_p4 }
  0x1d   : > { %p902_p1 = por %p901_p12, %p900_p13 }
  0x1f   : > { %p903_p2 = pnand %p902_p1, %p896_p7 }
  0x21   : > { %906 = shalt.err (!%p903_p2)
}
  0x22   : > { %s907_s28 = scalar_lea.vmem %s1101_s8, 128  ;;  %s1006_s29 = smov [#allocation2]  }
  0x23   : > { %p908_p3 = scmp.ne.s32.totalorder %s1101_s8, %s907_s28  ;;  %s912_s30 = sshll.u32 %s1006_s29, 4  ;;  %s913_s30 = int_to_ptr.vmem [resolvable:$false] %s912_s30 }
  0x24   : > { %s914_s4 = scalar_lea.vmem %s913_s30, 256  ;;  %p915_p9 = scmp.lt.s32.totalorder %s1101_s8, %s913_s30 }
  0x25   : > { %p910_p6 = pnand %p908_p3, %p894_p5  ;;  %p916_p4 = scmp.lt.s32.totalorder %s914_s4, %s907_s28 }
  0x27   : > { %p911_p11 = pneg %p910_p6  ;;  %p917_p10 = por %p916_p4, %p915_p9 }
  0x29   : > { %p918_p12 = pnand %p917_p10, %p911_p11 }
  0x2b   : > { %921 = shalt.err (!%p918_p12)
}
  0x2c   : > { %833 = dma.hbm_to_vmem [thread:$0]  (!%p1105_p0), %s1099_s6, 128, %s1101_s8, %s154_s10  }
  0x2d   : > { %p1222_p1 = scmp.lt.s32.totalorder %s1004_s17, 3  ;;  %p1223_p2 = scmp.ge.s32.totalorder %s1004_s17, 1 }
  0x2f   : > { %p173_p5 = pnand %p1223_p2, %p1222_p1 }
  0x30   : > { %s1141_s5 = sand.u32 (!%p173_p5), 1, %s988_s13  }
  0x31   : > { %176 = sbr.rel (%p173_p5) target bundleno = 319 (0x13f), region = 32  ;;  %s805_s7 = sshll.u32 (!%p173_p5), %s1141_s5, 3 }
  0x32   : > { %s179_s11 = scalar_lea.sflag (!%p173_p5), [#allocation3], %s1141_s5  ;;  %s182_s9 = scalar_lea.vmem (!%p173_p5), [#allocation2], %s805_s7 }
  0x38   : > { %975 = dma.done.wait (%p1077_p8), %s179_s11, 128  }
  0x39   : > { %977 = vsyncadd (%p1077_p8), %s179_s11, 4294967168  ;;  %v1007_v0 = vmov 0.0   ;;  %v1008_v1 = vmov 0   ;;  %vm221_vm0 = vcmask 1043456   ;;  %vm217_vm1 = vcmask 31744   ;;  %v208_v2 = vld [vmem:[%s182_s9] sm:$0xff] }
  0x3a   : > { %529 = vmatprep.mubr.f32.mxu0 %v1007_v0  ;;  %292 = vmatprep.mubr.f32.mxu1 %v1007_v0  ;;  %v207_v3 = vld [vmem:[%s1213_s1] sm:$0xf]  ;;  %v216_v5 = vcombine.high %v208_v2, %v208_v2  ;;  %v222_v6 = vsel %vm221_vm0, %v208_v2, 0  ;;  %s813_s24 = sshll.u32 %s996_s15, 7  ;;  %s204_s19 = scalar_lea.vmem [#allocation5], %s805_s7 }
  0x3b   : > { %890 = vset.pattern.permute.xlu0 %v1008_v1  ;;  %v209_v4 = vld [vmem:[%s1214_s2] sm:$0xf]  ;;  %v219_v7 = vsel %vm217_vm1, %v207_v3, 0  ;;  %v228_v8 = vand.u32 4294901760, %v222_v6  ;;  %s713_s21 = sshll.u32 %s204_s19, 4  ;;  %s1163_s28 = scalar_lea.hbm %s1215_s3, %s813_s24  ;;  %s1165_s21 = int_to_ptr.vmem [resolvable:$true] %s713_s21 }
  0x3c   : > { %212 = vperm.xlu0 %890, %v209_v4   ;;  %v293_v9 = vand.u32 4294901760, %v219_v7  ;;  %v224_v10 = vsel %vm221_vm0, %v216_v5, 0  ;;  %s697_s29 = scalar_lea.sflag [#allocation4], %s1141_s5  ;;  %s922_s30 = scalar_lea.vmem %s1165_s21, 128 }
  0x3d   : > { %v226_v11 = vand.u32 4294901760, %v224_v10  ;;  %v311_v12 = vsub.f32 %v222_v6, %v228_v8  ;;  %p923_p8 = scmp.ne.s32.totalorder %s1165_s21, %s922_s30  ;;  %p1224_p9 = scmp.ne.s32.totalorder %s1219_s25, 0 }
  0x3e   : > { %v294_v13 = vsub.f32 %v219_v7, %v293_v9  ;;  %s1009_s15 = smov [#allocation5]  }
  0x3f   : > { %464 = vmatprep.subr.mxu0 %v226_v11  ;;  %227 = vmatprep.subr.mxu1 %v226_v11  ;;  %v305_v15 = vsub.f32 %v224_v10, %v226_v11  ;;  %v312_v16 = vand.u32 4294901760, %v311_v12  ;;  %p924_p11 = pnand %p923_p8, %p1224_p9  ;;  %s926_s4 = sshll.u32 %s1009_s15, 4  ;;  %s927_s4 = int_to_ptr.vmem [resolvable:$false] %s926_s4 }
  0x40   : > { %v295_v14 = vand.u32 4294901760, %v294_v13  ;;  %466 = vmatpush1.msra.mxu0 %v228_v8  ;;  %229 = vmatpush1.msra.mxu1 %v228_v8  ;;  %s928_s7 = scalar_lea.vmem %s927_s4, 256  ;;  %p929_p7 = scmp.lt.s32.totalorder %s1165_s21, %s927_s4 }
  0x41   : > { %v306_v18 = vand.u32 4294901760, %v305_v15  ;;  %v313_v19 = vsub.f32 %v311_v12, %v312_v16  ;;  %p925_p0 = pneg %p924_p11  ;;  %p930_p13 = scmp.lt.s32.totalorder %s928_s7, %s922_s30 }
  0x42   : > { %533 = vmatmul.mubr.f32.vlgmr.msra.gmra.mrb[0].mxu0 %v295_v14  ;;  %v296_v17 = vsub.f32 %v294_v13, %v295_v14 }
  0x43   : > { %609 = vmatprep.mubr.f32.mxu0 %v1007_v0  ;;  %v307_v21 = vsub.f32 %v305_v15, %v306_v18  ;;  %542 = vmatprep.subr.mxu0 %v306_v18  ;;  %v314_v22 = vand.u32 4294901760, %v313_v19  ;;  %p931_p3 = por %p930_p13, %p929_p7 }
  0x44   : > { %v297_v20 = vand.u32 4294901760, %v296_v17  ;;  %546 = vmatpush1.msra.mxu0 %v312_v16 }
  0x45   : > { %v308_v23 = vand.u32 4294901760, %v307_v21  ;;  %618 = vmatprep.subr.mxu0 %v226_v11  ;;  %p932_p6 = pnand %p931_p3, %p925_p0 }
  0x46   : > { %298 = vmatmul.mubr.f32.vlgmr.msra.gmra.mrb[0].mxu1 %v297_v20 }
  0x47   : > { %378 = vmatprep.mubr.f32.mxu1 %v1007_v0  ;;  %309 = vmatprep.subr.mxu1 %v308_v23 }
  0x48   : > { %315 = vmatpush1.msra.mxu1 %v314_v22 }
  0x49   : > { %388 = vmatprep.subr.mxu1 %v305_v15 }
  0x4a   : > { %611 = vmatmul.mubr.f32.vlgmr.msra.gmra.mrb[0].mxu0 %v293_v9 }
  0x4b   : > { %620 = vmatpush1.msra.mxu0 %v228_v8  ;;  %683 = vmatprep.mubr.f32.mxu0 %v1007_v0 }
  0x4e   : > { %380 = vmatmul.mubr.f32.vlgmr.msra.gmra.mrb[0].mxu1 %v293_v9 }
  0x4f   : > { %391 = vmatpush1.msra.mxu1 %v311_v12  ;;  %454 = vmatprep.mubr.f32.mxu1 %v1007_v0 }
  0x52   : > { %685 = vmatmul.mubr.f32.vlgmr.msra.gmra.mrb[0].mxu0 %v293_v9 }
  0x56   : > { %457 = vmatmul.mubr.f32.vlgmr.msra.gmra.mrb[0].mxu1 %v294_v13 }
  0xbb   : > { %v213_v26 = vpop.permute.xlu0 %212 }
 0x125   : > { %v686_v24 = vpop.f32.mrb[0].mxu0 }
 0x126   : > { %v688_v25 = vpop.f32.mrb[1].mxu0 }
 0x129   : > { %v458_v27 = vpop.f32.mrb[0].mxu1 }
 0x12a   : > { %v814_v28 = vadd.f32 %v458_v27, %v213_v26  ;;  %v460_v29 = vpop.f32.mrb[1].mxu1 }
 0x12b   : > { %v816_v30 = vadd.f32 %v460_v29, %v213_v26 }
 0x12c   : > { %v815_v31 = vadd.f32 %v814_v28, %v686_v24 }
 0x12d   : > { %v817_v32 = vadd.f32 %v816_v30, %v688_v25 }
 0x12f   : > { %v693_v33 = vcombine.low %v815_v31, %v817_v32 }
 0x131   : > { %695 = vst [vmem:[%s204_s19] sm:$0xff] %v693_v33 }
 0x132   : > { %935 = shalt.err (!%p932_p6)
}
 0x133   : > { %s936_s5 = scalar_lea.hbm %s1163_s28, 128  ;;  %s940_s6 = scalar_lea.hbm %s1215_s3, 256 }
 0x134   : > { %p937_p4 = scmp.ne.s32.totalorder %s1163_s28, %s936_s5  ;;  %p941_p1 = scmp.lt.u32.totalorder %s1163_s28, %s1215_s3 }
 0x135   : > { %p942_p2 = scmp.lt.u32.totalorder %s940_s6, %s936_s5  ;;  %p944_p8 = scmp.lt.u32.totalorder %s936_s5, %s1163_s28 }
 0x136   : > { %p938_p10 = pnand %p937_p4, %p1224_p9 }
 0x137   : > { %p943_p5 = por %p942_p2, %p941_p1 }
 0x138   : > { %p939_p12 = pneg %p938_p10 }
 0x139   : > { %p945_p11 = por %p944_p8, %p943_p5 }
 0x13b   : > { %p946_p0 = pnand %p945_p11, %p939_p12 }
 0x13d   : > { %949 = shalt.err (!%p946_p0)
}
 0x13e   : > { %828 = dma.vmem_to_hbm [thread:$0]  (%p1224_p9), %s1165_s21, 128, %s1163_s28, %s697_s29  }
 0x13f PF: > { %s725_s18 = sand.u32 1, %s984_s12   ;;  %p1225_p7 = scmp.ne.s32.totalorder %s1220_s27, 0 }
 0x140   : > { %p1226_p13 = scmp.ge.s32.totalorder %s1004_s17, 2  ;;  %s726_s24 = scalar_lea.sflag [#allocation4], %s725_s18 }
 0x142   : > { %p835_p3 = pnand %p1226_p13, %p1225_p7 }
 0x144   : > { %979 = dma.done.wait (!%p835_p3), %s726_s24, 128  }
 0x145   : > { %981 = vsyncadd (!%p835_p3), %s726_s24, 4294967168  ;;  %s19_s17 = sadd.s32 1, %s1004_s17   ;;  %s1227_s12 = smov %s988_s13 }
 0x146   : > { %p16_p6 = scmp.ge.s32.totalorder %s19_s17, 4   ;;  %s1228_s13 = smov %s992_s14 }
 0x147   : > { %s1229_s14 = smov %s1086_s26  ;;  %s1230_s15 = smov %s1000_s16 }
 0x148   : > { %s1231_s16 = smov %s1233_s20  ;;  %18 = sbr.rel (!%p16_p6) target bundleno = 6 (0x6), region = 77 }
 0x14f   :  { %731 = vsyncpa [#allocation3], 1 }
 0x150   :  { %733 = vsyncpa [#allocation3 + $0x1], 1 }
 0x151   :  { %734 = vsyncpa [#allocation4], 1 }
 0x152   :  { %736 = vsyncpa [#allocation4 + $0x1], 1 }

</bundles_post_ra>
